<compile_context>
chip_gen: v7x
topology: tpu7x:2x2x1
jax: 0.10.0
libtpu: 0.0.40
codegen_flags: <defaults>
</compile_context>

<pallas_src>
import jax
import jax.numpy as jnp
from jax.experimental import pallas as pl
from jax.experimental.pallas import tpu as pltpu


_LANES = 128
_SUBLANES = 8
_NEG_INF = -1e30   # finite "-inf" for padded expert logits


def _round_up(n, m):
    return ((n + m - 1) // m) * m


def gating_moe_kernel(x_ref, w1_ref, b1_ref, w2_ref, b2_ref, o_ref):
    """Fused Linear -> ReLU -> Linear -> Softmax on one (TB, D) batch tile."""
    # Matmul 1 (MXU); f32 accumulation regardless of operand dtype.
    h = jnp.dot(x_ref[...], w1_ref[...], preferred_element_type=jnp.float32)
    h = jnp.maximum(h + b1_ref[...], 0.0)                       # bias + ReLU in f32
    # Matmul 2 (MXU); operands in the weight dtype (bf16 path), acc in f32.
    logits = jnp.dot(h.astype(w2_ref.dtype), w2_ref[...],
                     preferred_element_type=jnp.float32)
    logits = logits + b2_ref[...]                               # padded cols -> -1e30
    # Numerically stable softmax over the (padded) expert axis.
    m = jnp.max(logits, axis=-1, keepdims=True)
    e = jnp.exp(logits - m)                                     # padded cols -> exactly 0
    denom = jnp.sum(e, axis=-1, keepdims=True)
    # Exact divide: rows must sum to 1 (approx reciprocal previously broke this).
    o_ref[...] = (e / denom).astype(o_ref.dtype)


def gating_moe_forward(x, w1, b1, w2, b2, *, block_b=512,
                       compute_dtype=jnp.float32):
    """x: (B, D); w1: (D, H); b1: (1, H); w2: (H, E); b2: (1, E) -> (B, E) f32.

    Weights are stored pre-transposed ((in, out)) so the kernel does x @ W + b.
    """
    B, D = x.shape
    H = w1.shape[1]
    E = w2.shape[1]

    # Lane-dense hidden / expert axes (unmasked stores, dense vreg layouts).
    H_pad = _round_up(H, _LANES)
    E_pad = _round_up(E, _LANES)
    # Batch tile: multiple of 8 sublanes, capped by block_b.
    tb = _round_up(min(block_b, _round_up(B, _SUBLANES)), _SUBLANES)
    B_pad = _round_up(B, tb)

    # bf16 operand path halves HBM traffic for x/w1/w2 and doubles MXU rate;
    # biases and all accumulation / epilogue math stay f32.
    xp = x.astype(compute_dtype)
    w1p = w1.astype(compute_dtype)
    w2p = w2.astype(compute_dtype)
    b1p = b1.astype(jnp.float32)
    b2p = b2.astype(jnp.float32)

    if B_pad != B:
        xp = jnp.pad(xp, ((0, B_pad - B), (0, 0)))
    if H_pad != H:
        # Zero-padded hidden units: ReLU(0 + 0) = 0, and their w2 rows are 0,
        # so they contribute nothing to the expert logits.
        w1p = jnp.pad(w1p, ((0, 0), (0, H_pad - H)))
        b1p = jnp.pad(b1p, ((0, 0), (0, H_pad - H)))
        w2p = jnp.pad(w2p, ((0, H_pad - H), (0, 0)))
    if E_pad != E:
        w2p = jnp.pad(w2p, ((0, 0), (0, E_pad - E)))
        # Padded expert columns get a huge negative bias -> exp() underflows to 0.
        b2p = jnp.pad(b2p, ((0, 0), (0, E_pad - E)), constant_values=_NEG_INF)

    grid = (B_pad // tb,)

    itemsize = jnp.dtype(compute_dtype).itemsize
    # VMEM budget: resident weights + double-buffered x/out tiles + intermediates.
    resident = (w1p.size + w2p.size) * itemsize + (b1p.size + b2p.size) * 4
    streamed = 2 * tb * D * itemsize + 2 * tb * E_pad * 4
    scratch = 2 * tb * (H_pad + E_pad) * 4
    vmem_limit = int(min(max(2 * (resident + streamed + scratch), 4 << 20), 64 << 20))
    # TODO(synk): if the resident weights alone exceed ~64 MiB (v7x VMEM), split
    # the first matmul over a K grid axis with an f32 accumulator scratch.

    cost = pl.CostEstimate(
        flops=2 * B_pad * D * H_pad + 2 * B_pad * H_pad * E_pad,
        transcendentals=B_pad * E_pad,
        bytes_accessed=(xp.size * itemsize + w1p.size * itemsize
                        + w2p.size * itemsize + b1p.size * 4 + b2p.size * 4
                        + B_pad * E_pad * 4),
    )

    out_padded = pl.pallas_call(
        gating_moe_kernel,
        out_shape=jax.ShapeDtypeStruct((B_pad, E_pad), jnp.float32),
        grid=grid,
        in_specs=[
            pl.BlockSpec((tb, D), lambda i: (i, 0)),          # x tile (pipelined)
            pl.BlockSpec((D, H_pad), lambda i: (0, 0)),       # w1 resident in VMEM
            pl.BlockSpec((1, H_pad), lambda i: (0, 0)),       # b1 resident
            pl.BlockSpec((H_pad, E_pad), lambda i: (0, 0)),   # w2 resident (padded)
            pl.BlockSpec((1, E_pad), lambda i: (0, 0)),       # b2 resident (padded)
        ],
        out_specs=pl.BlockSpec((tb, E_pad), lambda i: (i, 0)),
        compiler_params=pltpu.CompilerParams(
            dimension_semantics=("parallel",),                # v7x: shard over 2 TCs
            vmem_limit_bytes=vmem_limit,
        ),
        cost_estimate=cost,
    )(xp, w1p, b1p, w2p, b2p)

    return out_padded[:B, :E]


def init_gating_moe_params(key, input_dim, moe_hidden_scale, num_local_experts):
    """Synthetic init mirroring nn.Linear shapes (stored pre-transposed (in, out))."""
    hidden_dim = int(input_dim // moe_hidden_scale)
    k1, k2, k3, k4 = jax.random.split(key, 4)
    lim1 = 1.0 / (input_dim ** 0.5)
    lim2 = 1.0 / (hidden_dim ** 0.5)
    w1 = jax.random.uniform(k1, (input_dim, hidden_dim), jnp.float32, -lim1, lim1)
    b1 = jax.random.uniform(k2, (1, hidden_dim), jnp.float32, -lim1, lim1)
    w2 = jax.random.uniform(k3, (hidden_dim, num_local_experts), jnp.float32, -lim2, lim2)
    b2 = jax.random.uniform(k4, (1, num_local_experts), jnp.float32, -lim2, lim2)
    return w1, b1, w2, b2


def reference_forward(x, w1, b1, w2, b2):
    h = jnp.maximum(x @ w1 + b1, 0.0)
    logits = h @ w2 + b2
    return jax.nn.softmax(logits, axis=-1)


if __name__ == "__main__":
    # NOTE: at these tiny shapes a standalone custom call is launch-overhead
    # bound; in production the gating softmax should be fused with the MoE
    # dispatch that consumes it. Shapes here just mirror the module's forward.
    batch = 8
    input_dim = 32
    moe_hidden_scale = 2        # -> hidden_dim = 16
    num_local_experts = 4

    key = jax.random.PRNGKey(0)
    kx, kp = jax.random.split(key)
    x = jax.random.normal(kx, (batch, input_dim), jnp.float32)
    w1, b1, w2, b2 = init_gating_moe_params(
        kp, input_dim, moe_hidden_scale, num_local_experts)

    ref = reference_forward(x, w1, b1, w2, b2)

    # f32 operand path (exact divide -> rows sum to 1 up to f32 rounding).
    out = jax.block_until_ready(gating_moe_forward(x, w1, b1, w2, b2))
    assert out.shape == (batch, num_local_experts)
    assert jnp.allclose(out, ref, atol=1e-4, rtol=1e-4), "f32 mismatch vs JAX reference"
    assert jnp.allclose(jnp.sum(out, axis=-1), 1.0, atol=1e-4), "softmax rows must sum to ~1"

    # bf16 MXU operand path (f32 accumulation / epilogue) with looser tolerance.
    out_bf16 = jax.block_until_ready(
        gating_moe_forward(x, w1, b1, w2, b2, compute_dtype=jnp.bfloat16))
    assert out_bf16.shape == (batch, num_local_experts)
    assert jnp.allclose(out_bf16, ref, atol=5e-2, rtol=5e-2), "bf16 mismatch vs JAX reference"
    assert jnp.allclose(jnp.sum(out_bf16, axis=-1), 1.0, atol=1e-3), "bf16 rows must sum to ~1"

    print("KERNEL_OK")
</pallas_src>

<mosaic_0001>
module attributes {stable_mosaic.version = 11 : i64} {
  func.func @gating_moe_kernel(%arg0: i32, %arg1: memref<8x32xf32, #tpu.memory_space<vmem>>, %arg2: memref<32x128xf32, #tpu.memory_space<vmem>>, %arg3: memref<1x128xf32, #tpu.memory_space<vmem>>, %arg4: memref<128x128xf32, #tpu.memory_space<vmem>>, %arg5: memref<1x128xf32, #tpu.memory_space<vmem>>, %arg6: memref<8x128xf32, #tpu.memory_space<vmem>>) attributes {dimension_semantics = [#tpu.dimension_semantics<parallel>], iteration_bounds = array<i64: 1>, scalar_prefetch = 0 : i64, scratch_operands = 0 : i64, tpu.core_type = #tpu.core_type<tc>, window_params = [{transform_indices = @transform_0, window_bounds = array<i64: 8, 32>}, {pipeline_mode = #tpu.pipeline_mode<synchronous>, transform_indices = @transform_1, window_bounds = array<i64: 32, 128>}, {pipeline_mode = #tpu.pipeline_mode<synchronous>, transform_indices = @transform_2, window_bounds = array<i64: 1, 128>}, {pipeline_mode = #tpu.pipeline_mode<synchronous>, transform_indices = @transform_3, window_bounds = array<i64: 128, 128>}, {pipeline_mode = #tpu.pipeline_mode<synchronous>, transform_indices = @transform_4, window_bounds = array<i64: 1, 128>}, {transform_indices = @transform_5, window_bounds = array<i64: 8, 128>}]} {
    %c0 = arith.constant 0 : index
    %c0_0 = arith.constant 0 : index
    %0 = vector.load %arg1[%c0, %c0_0] : memref<8x32xf32, #tpu.memory_space<vmem>>, vector<8x32xf32>
    %c0_1 = arith.constant 0 : index
    %c0_2 = arith.constant 0 : index
    %1 = vector.load %arg2[%c0_1, %c0_2] : memref<32x128xf32, #tpu.memory_space<vmem>>, vector<32x128xf32>
    %cst = arith.constant dense<0.000000e+00> : vector<8x128xf32>
    %2 = tpu.matmul %0, %1, %cst {dimension_numbers = #tpu.dot_dimension_numbers<[1], [0], [0], [1], [0, 0, 1, 1], [], []>} : vector<8x32xf32>, vector<32x128xf32>, vector<8x128xf32> -> vector<8x128xf32>
    %c0_3 = arith.constant 0 : index
    %c0_4 = arith.constant 0 : index
    %3 = vector.load %arg3[%c0_3, %c0_4] : memref<1x128xf32, #tpu.memory_space<vmem>>, vector<1x128xf32>
    %4 = vector.broadcast %3 : vector<1x128xf32> to vector<8x128xf32>
    %5 = arith.addf %2, %4 : vector<8x128xf32>
    %cst_5 = arith.constant 0.000000e+00 : f32
    %6 = vector.broadcast %cst_5 : f32 to vector<8x128xf32>
    %7 = arith.maximumf %5, %6 : vector<8x128xf32>
    %c0_6 = arith.constant 0 : index
    %c0_7 = arith.constant 0 : index
    %8 = vector.load %arg4[%c0_6, %c0_7] : memref<128x128xf32, #tpu.memory_space<vmem>>, vector<128x128xf32>
    %cst_8 = arith.constant dense<0.000000e+00> : vector<8x128xf32>
    %9 = tpu.matmul %7, %8, %cst_8 {dimension_numbers = #tpu.dot_dimension_numbers<[1], [0], [0], [1], [0, 0, 1, 1], [], []>} : vector<8x128xf32>, vector<128x128xf32>, vector<8x128xf32> -> vector<8x128xf32>
    %c0_9 = arith.constant 0 : index
    %c0_10 = arith.constant 0 : index
    %10 = vector.load %arg5[%c0_9, %c0_10] : memref<1x128xf32, #tpu.memory_space<vmem>>, vector<1x128xf32>
    %11 = vector.broadcast %10 : vector<1x128xf32> to vector<8x128xf32>
    %12 = arith.addf %9, %11 : vector<8x128xf32>
    %cst_11 = arith.constant dense<0xFF800000> : vector<8xf32>
    %13 = vector.multi_reduction <maximumf>, %12, %cst_11 [1] : vector<8x128xf32> to vector<8xf32>
    %14 = vector.shape_cast %13 : vector<8xf32> to vector<8x1xf32>
    %15 = vector.broadcast %14 : vector<8x1xf32> to vector<8x128xf32>
    %16 = arith.subf %12, %15 : vector<8x128xf32>
    %17 = math.exp %16 : vector<8x128xf32>
    %cst_12 = arith.constant dense<0.000000e+00> : vector<8xf32>
    %18 = vector.multi_reduction <add>, %17, %cst_12 [1] : vector<8x128xf32> to vector<8xf32>
    %19 = vector.shape_cast %18 : vector<8xf32> to vector<8x1xf32>
    %20 = vector.broadcast %19 : vector<8x1xf32> to vector<8x128xf32>
    %21 = arith.divf %17, %20 : vector<8x128xf32>
    %c0_13 = arith.constant 0 : index
    %c0_14 = arith.constant 0 : index
    %22 = vector.load %arg6[%c0_13, %c0_14] : memref<8x128xf32, #tpu.memory_space<vmem>>, vector<8x128xf32>
    tpu.vector_store %arg6[%c0_13, %c0_14], %21 {strides = array<i32>} : memref<8x128xf32, #tpu.memory_space<vmem>>, vector<8x128xf32>,
    return
  }
  func.func @transform_0(%arg0: i32) -> (i32, i32) {
    %c0_i32 = arith.constant 0 : i32
    %c0_i32_0 = arith.constant 0 : i32
    return %arg0, %c0_i32 : i32, i32
  }
  func.func @transform_1(%arg0: i32) -> (i32, i32) {
    %c0_i32 = arith.constant 0 : i32
    %c0_i32_0 = arith.constant 0 : i32
    %c0_i32_1 = arith.constant 0 : i32
    return %c0_i32, %c0_i32_0 : i32, i32
  }
  func.func @transform_2(%arg0: i32) -> (i32, i32) {
    %c0_i32 = arith.constant 0 : i32
    %c0_i32_0 = arith.constant 0 : i32
    %c0_i32_1 = arith.constant 0 : i32
    return %c0_i32, %c0_i32_0 : i32, i32
  }
  func.func @transform_3(%arg0: i32) -> (i32, i32) {
    %c0_i32 = arith.constant 0 : i32
    %c0_i32_0 = arith.constant 0 : i32
    %c0_i32_1 = arith.constant 0 : i32
    return %c0_i32, %c0_i32_0 : i32, i32
  }
  func.func @transform_4(%arg0: i32) -> (i32, i32) {
    %c0_i32 = arith.constant 0 : i32
    %c0_i32_0 = arith.constant 0 : i32
    %c0_i32_1 = arith.constant 0 : i32
    return %c0_i32, %c0_i32_0 : i32, i32
  }
  func.func @transform_5(%arg0: i32) -> (i32, i32) {
    %c0_i32 = arith.constant 0 : i32
    %c0_i32_0 = arith.constant 0 : i32
    return %arg0, %c0_i32 : i32, i32
  }
}

</mosaic_0001>

<bundles_post_ra>
// kernel: tpu_custom_call.1
= control target key start
LH: loop header
LB: loop body
LE: loop exit
PB: predicated region body
PF: predicated region fallthrough
CT: control target
= control target key end

     0   :  { %10 = vsyncpa [#allocation3], 0  ;;  %s573_s0 = inlined_call_operand.hbm [shape: f32[8,32], index: 0, kind: input, shape index: {}]   ;;  %s574_s1 = inlined_call_operand.hbm [shape: f32[32,128], index: 1, kind: input, shape index: {}]   ;;  %s575_s2 = inlined_call_operand.vmem [shape: f32[1,128], index: 2, kind: input, shape index: {}]   ;;  %s576_s3 = inlined_call_operand.hbm [shape: f32[128,128], index: 3, kind: input, shape index: {}]   ;;  %s577_s4 = inlined_call_operand.vmem [shape: f32[1,128], index: 4, kind: input, shape index: {}]   ;;  %s578_s5 = inlined_call_operand.hbm [shape: f32[8,128], index: 5, kind: output, shape index: {}]  }
   0x1   :  { %11 = vsyncpa [#allocation6], 0 }
   0x2   :  { %12 = vsyncpa [#allocation4], 0  ;;  %s474_s18 = smov [#allocation5]   ;;  %s380_s22 = scalar_lea.hbm %s574_s1, 512 }
   0x3   :  { %s28_s19 = sshll.u32 %s474_s18, 4  ;;  %p381_p0 = scmp.ne.s32.totalorder %s574_s1, %s380_s22  ;;  %s29_s19 = int_to_ptr.vmem [resolvable:$true] %s28_s19 }
   0x4   :  { %p384_p1 = scmp.lt.u32.totalorder %s380_s22, %s574_s1 }
   0x6   :  { %p386_p2 = pnand %p384_p1, %p381_p0 }
   0x8   :  { %389 = shalt.err (!%p386_p2)
}
   0x9   :  { %s390_s27 = scalar_lea.vmem %s29_s19, 512  ;;  %p395_p4 = scmp.lt.s32.totalorder %s29_s19, %s29_s19 }
   0xa   :  { %p391_p3 = scmp.ne.s32.totalorder %s29_s19, %s390_s27  ;;  %p396_p5 = scmp.lt.s32.totalorder %s390_s27, %s390_s27 }
   0xc   :  { %p397_p6 = por %p396_p5, %p395_p4 }
   0xe   :  { %p398_p7 = pnand %p397_p6, %p391_p3 }
  0x10   :  { %401 = shalt.err (!%p398_p7)
}
  0x11   :  { %s475_s28 = smov 128   ;;  %s476_s29 = smov 8  }
  0x12   :  { %34 = dma.hbm_to_vmem [thread:$0]  %s574_s1, 512, %s29_s19, [#allocation6], %s475_s28, %s475_s28, %s476_s29  }
  0x13   :  { %s477_s7 = smov [#allocation2]   ;;  %s478_s9 = smov [#allocation7]  }
  0x14   :  { %s19_s8 = sshll.u32 %s477_s7, 4  ;;  %s42_s10 = sshll.u32 %s478_s9, 4  ;;  %s20_s8 = int_to_ptr.vmem [resolvable:$true] %s19_s8  ;;  %s43_s10 = int_to_ptr.vmem [resolvable:$true] %s42_s10 }
  0x15   :  { %s402_s13 = scalar_lea.hbm %s573_s0, 128 }
  0x16   :  { %p403_p8 = scmp.ne.s32.totalorder %s573_s0, %s402_s13  ;;  %p406_p9 = scmp.lt.u32.totalorder %s402_s13, %s573_s0 }
  0x18   :  { %p408_p10 = pnand %p406_p9, %p403_p8 }
  0x1a   :  { %411 = shalt.err (!%p408_p10)
}
  0x1b   :  { %s412_s1 = scalar_lea.vmem %s20_s8, 128  ;;  %p417_p12 = scmp.lt.s32.totalorder %s20_s8, %s20_s8 }
  0x1c   :  { %p413_p11 = scmp.ne.s32.totalorder %s20_s8, %s412_s1  ;;  %p418_p13 = scmp.lt.s32.totalorder %s412_s1, %s412_s1 }
  0x1e   :  { %p419_p0 = por %p418_p13, %p417_p12 }
  0x20   :  { %p420_p1 = pnand %p419_p0, %p413_p11 }
  0x22   :  { %423 = shalt.err (!%p420_p1)
}
  0x23   :  { %22 = dma.hbm_to_vmem [thread:$0]  %s573_s0, 128, %s20_s8, [#allocation3]  }
  0x24   :  { %s424_s22 = scalar_lea.hbm %s576_s3, 2048 }
  0x25   :  { %p425_p2 = scmp.ne.s32.totalorder %s576_s3, %s424_s22  ;;  %p428_p3 = scmp.lt.u32.totalorder %s424_s22, %s576_s3 }
  0x27   :  { %p430_p4 = pnand %p428_p3, %p425_p2 }
  0x29   :  { %433 = shalt.err (!%p430_p4)
}
  0x2a   :  { %s434_s27 = scalar_lea.vmem %s43_s10, 2048  ;;  %p439_p6 = scmp.lt.s32.totalorder %s43_s10, %s43_s10 }
  0x2b   :  { %p435_p5 = scmp.ne.s32.totalorder %s43_s10, %s434_s27  ;;  %p440_p7 = scmp.lt.s32.totalorder %s434_s27, %s434_s27 }
  0x2d   :  { %p441_p8 = por %p440_p7, %p439_p6 }
  0x2f   :  { %p442_p9 = pnand %p441_p8, %p435_p5 }
  0x31   :  { %445 = shalt.err (!%p442_p9)
}
  0x32   :  { %48 = dma.hbm_to_vmem [thread:$0]  %s576_s3, 2048, %s43_s10, [#allocation6], %s475_s28, %s475_s28, %s476_s29  }
  0x33   :  { %468 = dma.done.wait [#allocation3], 128  }
  0x34   :  { %469 = vsyncadd [#allocation3], 4294967168 }
  0x35   :  { %470 = dma.done.wait [#allocation6], 2560  }
  0x36   :  { %471 = vsyncadd [#allocation6], 4294964736  ;;  %v479_v0 = vmov 0.0|0.0   ;;  %vm480_vm0 = vmmov 0   ;;  %v481_v1 = vmov 0.0   ;;  %v61_v2 = vld [vmem:[#allocation5] sm:$0xff] }
  0x37   :  { %337 = vmatprep.subr.bf16.mxu0 %v479_v0  ;;  %299 = vmatprep.mubr.msk.f32.mxu0 %vm480_vm0, %v481_v1  ;;  %v62_v3 = vld [vmem:[#allocation5 + $0x8] sm:$0xff]  ;;  %v63_v4 = vld [vmem:[#allocation5 + $0x10] sm:$0xff]  ;;  %v64_v6 = vld [vmem:[#allocation5 + $0x18] sm:$0xff]  ;;  %vm72_vm1 = vcmask 261120  }
  0x38   :  { %343 = vmatprep.subr.bf16.mxu1 %v479_v0  ;;  %334 = vmatprep.mubr.msk.f32.mxu1 %vm480_vm0, %v481_v1  ;;  %v338_v5 = vpack.c.bf16 %v62_v3, %v61_v2  ;;  %v147_v7 = vld [vmem:[#allocation7] sm:$0xff]  ;;  %v148_v8 = vld [vmem:[#allocation7 + $0x8] sm:$0xff]  ;;  %v149_v9 = vld [vmem:[#allocation7 + $0x10] sm:$0xff]  ;;  %v341_v11 = vpack.c.bf16 %v64_v6, %v63_v4 }
  0x39   :  { %v150_v10 = vld [vmem:[#allocation7 + $0x18] sm:$0xff]  ;;  %v344_v12 = vpack.c.bf16 %v148_v8, %v147_v7  ;;  %v151_v14 = vld [vmem:[#allocation7 + $0x20] sm:$0xff]  ;;  %v152_v15 = vld [vmem:[#allocation7 + $0x28] sm:$0xff] }
  0x3a   :  { %339 = vmatpush3.bf16.msra.mxu0 %v338_v5  ;;  %v347_v13 = vpack.c.bf16 %v150_v10, %v149_v9  ;;  %v60_v16 = vld [vmem:[#allocation2] sm:$0xff]  ;;  %v350_v17 = vpack.c.bf16 %v152_v15, %v151_v14  ;;  %v153_v18 = vld [vmem:[#allocation7 + $0x30] sm:$0xff]  ;;  %v155_v21 = vld [vmem:[#allocation7 + $0x40] sm:$0xff] }
  0x3b   :  { %340 = vmatprep.subr.bf16.mxu0 %v479_v0  ;;  %345 = vmatpush3.bf16.msra.mxu1 %v344_v12  ;;  %v154_v19 = vld [vmem:[#allocation7 + $0x38] sm:$0xff]  ;;  %v156_v22 = vld [vmem:[#allocation7 + $0x48] sm:$0xff]  ;;  %v157_v24 = vld [vmem:[#allocation7 + $0x50] sm:$0xff] }
  0x3c   :  { %346 = vmatprep.subr.bf16.mxu1 %v479_v0  ;;  %v353_v20 = vpack.c.bf16 %v154_v19, %v153_v18  ;;  %v356_v23 = vpack.c.bf16 %v156_v22, %v155_v21  ;;  %v158_v25 = vld [vmem:[#allocation7 + $0x58] sm:$0xff]  ;;  %v159_v27 = vld [vmem:[#allocation7 + $0x60] sm:$0xff]  ;;  %v160_v28 = vld [vmem:[#allocation7 + $0x68] sm:$0xff] }
  0x3d   :  { %v359_v26 = vpack.c.bf16 %v158_v25, %v157_v24  ;;  %v362_v29 = vpack.c.bf16 %v160_v28, %v159_v27  ;;  %v161_v30 = vld [vmem:[#allocation7 + $0x70] sm:$0xff]  ;;  %v162_v31 = vld [vmem:[#allocation7 + $0x78] sm:$0xff] }
  0x3e   :  { %342 = vmatpush3.bf16.msra.mxu0 %v341_v11  ;;  %v365_v32 = vpack.c.bf16 %v162_v31, %v161_v30  ;;  %v266_v33 = vld [vmem:[%s575_s2] ss:$0 sm:$0xff]  ;;  %s482_s2 = smov [#allocation8]  }
  0x3f   :  { %348 = vmatpush3.bf16.msra.mxu1 %v347_v13  ;;  %v268_v38 = vld [vmem:[%s577_s4] ss:$0 sm:$0xff]  ;;  %s256_s7 = sshll.u32 %s482_s2, 4  ;;  %s257_s7 = int_to_ptr.vmem [resolvable:$true] %s256_s7 }
  0x40   :  { %349 = vmatprep.subr.bf16.mxu1 %v479_v0  ;;  %s446_s8 = scalar_lea.vmem %s257_s7, 128  ;;  %p451_p11 = scmp.lt.s32.totalorder %s257_s7, %s257_s7 }
  0x41   :  { %300 = vmatmul.mubr.msk.f32.vlgmr.msra.gmra.mrb[0].mxu0 %vm72_vm1, %v60_v16  ;;  %p447_p10 = scmp.ne.s32.totalorder %s257_s7, %s446_s8  ;;  %p452_p12 = scmp.lt.s32.totalorder %s446_s8, %s446_s8 }
  0x43   :  { %351 = vmatpush3.bf16.msra.mxu1 %v350_v17  ;;  %p453_p13 = por %p452_p12, %p451_p11 }
  0x44   :  { %352 = vmatprep.subr.bf16.mxu1 %v479_v0 }
  0x45   :  { %p454_p0 = pnand %p453_p13, %p447_p10 }
  0x47   :  { %354 = vmatpush3.bf16.msra.mxu1 %v353_v20 }
  0x48   :  { %355 = vmatprep.subr.bf16.mxu1 %v479_v0 }
  0x4b   :  { %357 = vmatpush3.bf16.msra.mxu1 %v356_v23 }
  0x4c   :  { %358 = vmatprep.subr.bf16.mxu1 %v479_v0 }
  0x4f   :  { %360 = vmatpush3.bf16.msra.mxu1 %v359_v26 }
  0x50   :  { %361 = vmatprep.subr.bf16.mxu1 %v479_v0 }
  0x53   :  { %363 = vmatpush3.bf16.msra.mxu1 %v362_v29 }
  0x54   :  { %364 = vmatprep.subr.bf16.mxu1 %v479_v0 }
  0x57   :  { %366 = vmatpush3.bf16.msra.mxu1 %v365_v32 }
 0x114   :  { %v142_v34 = vpop.f32.mrb[0].mxu0 }
 0x115   :  { %v143_v35 = vadd.f32 %v266_v33, %v142_v34  ;;  %v301_v36 = vpop.f32.mrb[1].mxu0 }
 0x117   :  { %v146_v37 = vmax.f32 %v143_v35, 0.0 }
 0x119   :  { %335 = vmatmul.mubr.f32.vlgmr.msra.gmra.mrb[0].mxu1 %v146_v37 }
 0x1ec   :  { %v236_v39 = vpop.f32.mrb[0].mxu1 }
 0x1ed   :  { %v237_v40 = vadd.f32 %v268_v38, %v236_v39  ;;  %v336_v41 = vpop.f32.mrb[1].mxu1 }
 0x1ef   :  { %240 = vmax.xlane.f32.xlu0 %v237_v40 }
 0x27c   :  { %v241_v42 = vpop.xlane.xlu0 %240 }
 0x27d   :  { %v242_v43 = vsub.f32 %v237_v40, %v241_v42 }
 0x27f   :  { %v243_v44 = vmul.f32 1.442695, %v242_v43 }
 0x281   :  { %376 = vpow2.f32 %v243_v44 }
 0x28b   :  { %v377_v45 = vpop.eup %376 }
 0x28c   :  { %245 = vadd.xlane.f32.xlu0 %v377_v45 }
 0x319   :  { %v246_v46 = vpop.xlane.xlu0 %245 }
 0x31a   :  { %378 = vrcp.f32 %v246_v46 }
 0x324   :  { %v379_v47 = vpop.eup %378 }
 0x325   :  { %v248_v48 = vmul.f32 %v379_v47, %v377_v45 }
 0x327   :  { %249 = vst [vmem:[#allocation8] sm:$0xff] %v248_v48 }
 0x328   :  { %457 = shalt.err (!%p454_p0)
}
 0x329   :  { %s458_s10 = scalar_lea.hbm %s578_s5, 128 }
 0x32a   :  { %p459_p1 = scmp.ne.s32.totalorder %s578_s5, %s458_s10  ;;  %p462_p2 = scmp.lt.u32.totalorder %s458_s10, %s578_s5 }
 0x32c   :  { %p464_p3 = pnand %p462_p2, %p459_p1 }
 0x32e   :  { %467 = shalt.err (!%p464_p3)
}
 0x32f   :  { %259 = dma.vmem_to_hbm [thread:$0]  %s257_s7, 128, %s578_s5, [#allocation4]  }
 0x330   :  { %472 = dma.done.wait [#allocation4], 128  }
 0x331   :  { %473 = vsyncadd [#allocation4], 4294967168 }
 0x332   :  { %263 = vsyncpa [#allocation3], 1 }
 0x333   :  { %264 = vsyncpa [#allocation6], 1 }
 0x334   :  { %265 = vsyncpa [#allocation4], 1 }

</bundles_post_ra>
